<compile_context>
chip_gen: v6e
topology: v6e:2x2x1
jax: 0.10.0
libtpu: 0.0.40
codegen_flags: <defaults>
</compile_context>

<pallas_src>
import functools

import jax
import jax.numpy as jnp
from jax.experimental import pallas as pl
from jax.experimental.pallas import tpu as pltpu


def _scaleu_kernel(x_ref, w1_ref, w2_ref, out_ref, acc_ref, *,
                   hw, needs_mask, lane, unroll):
    # x_ref : (1, C, T)         w1_ref : (C, C//r)      w2_ref : (C//r, out)
    # out_ref: (1, 1, out)      acc_ref: (1, C, lane) f32 scratch
    k = pl.program_id(1)
    nk = pl.num_programs(1)
    t_block = x_ref.shape[-1]
    n_chunks = t_block // lane

    @pl.when(k == 0)
    def _init():
        acc_ref[...] = jnp.zeros_like(acc_ref)

    def _accumulate(masked):
        # Elementwise partial sums on the VPU; the single XLU cross-lane reduce
        # happens once in the finalize step.
        def add_chunk(start):
            xc = x_ref[:, :, pl.ds(start, lane)].astype(jnp.float32)
            if masked:
                # Last spatial block may extend past HW; the tail of the VMEM
                # buffer is garbage (Pallas does not zero-guard partial blocks).
                lane_idx = jax.lax.broadcasted_iota(jnp.int32, xc.shape, 2)
                xc = jnp.where(k * t_block + start + lane_idx < hw, xc, 0.0)
            acc_ref[...] += xc

        if n_chunks == 1:
            add_chunk(0)
        else:
            def body(j, carry):
                add_chunk(pl.multiple_of(j * lane, lane))
                return carry
            jax.lax.fori_loop(0, n_chunks, body, 0, unroll=unroll)

    if needs_mask:
        # Mask only the final (partial) block; bulk blocks accumulate mask-free.
        @pl.when(k < nk - 1)
        def _bulk():
            _accumulate(masked=False)

        @pl.when(k == nk - 1)
        def _tail():
            _accumulate(masked=True)
    else:
        _accumulate(masked=False)

    @pl.when(k == nk - 1)
    def _finalize():
        pooled = jnp.sum(acc_ref[...], axis=-1) * (1.0 / hw)             # (1, C)
        h = jnp.dot(pooled, w1_ref[...].astype(jnp.float32),
                    preferred_element_type=jnp.float32)
        h = h * jax.nn.sigmoid(h)                                        # SiLU
        y = jnp.dot(h, w2_ref[...].astype(jnp.float32),
                    preferred_element_type=jnp.float32)
        out_ref[...] = y[:, None, :].astype(out_ref.dtype)


@functools.lru_cache(maxsize=1)
def _vmem_capacity_bytes() -> int:
    """Physical VMEM of the attached TPU (64 MiB on v7x, 128 MiB on v5e/v6e)."""
    try:
        cap = getattr(pltpu.get_tpu_info(), "vmem_capacity_bytes", None)
        if cap:
            return int(cap)
    except Exception:
        pass
    return 64 << 20        # conservative (v7x) fallback


def _spatial_tile(hw: int, c: int, itemsize: int) -> int:
    """Lane-axis tile: full HW if it fits, else a multiple of 128 sized so each
    streamed (1, C, T) block is multi-MiB while two double-buffered copies plus
    weights/accumulator/headroom stay well inside this generation's VMEM."""
    vmem_cap = _vmem_capacity_bytes()
    # ~vmem/6 per x buffer: 2 buffers <= vmem/3.  ~10.6 MiB on v7x, 20 MiB on
    # v5e/v6e -> T up to tens of thousands of lanes for small C.
    per_buf = max(4 << 20, min(vmem_cap // 6, 20 << 20))
    t = per_buf // max(1, c * itemsize)
    if t >= hw:
        return hw                              # single full-extent block
    return max(128, (t // 128) * 128)


@functools.partial(jax.jit, static_argnames=("out_channels", "tile_hw"))
def scaleu_forward(x, w1_t, w2_t, *, out_channels, tile_hw=None):
    """x: (B, C, H, W) NCHW.  w1_t: (C, C//r).  w2_t: (C//r, out_channels).
    tile_hw: optional static spatial-tile override (used by regression tests)."""
    b, c, h, w = x.shape
    hw = h * w
    c_red = w1_t.shape[1]
    x_flat = x.reshape(b, c, hw)               # free reshape (trailing-dim merge)

    itemsize = x.dtype.itemsize
    t = _spatial_tile(hw, c, itemsize) if tile_hw is None else min(int(tile_hw), hw)
    if t < hw and t % 128 != 0:
        raise ValueError("spatial tile must be a multiple of 128 or the full H*W")
    num_k = pl.cdiv(hw, t)
    lane = 128 if (t % 128 == 0) else t
    n_chunks = t // lane
    needs_mask = (hw % t) != 0
    unroll = next((u for u in (8, 4, 2) if n_chunks % u == 0), 1)

    kernel = functools.partial(_scaleu_kernel, hw=hw, needs_mask=needs_mask,
                               lane=lane, unroll=unroll)

    w_bytes = (w1_t.size * w1_t.dtype.itemsize + w2_t.size * w2_t.dtype.itemsize)
    vmem_cap = _vmem_capacity_bytes()
    vmem_need = int(2 * c * t * itemsize           # double-buffered x blocks
                    + 2 * w_bytes                  # resident weight buffers
                    + c * lane * 4                 # f32 accumulator scratch
                    + 2 * out_channels * itemsize  # output buffers
                    + (4 << 20))                   # headroom
    vmem_limit = int(max(16 << 20, min(vmem_need, (vmem_cap * 3) // 4)))

    cost = pl.CostEstimate(
        flops=b * c * hw + 2 * b * c * c_red + 2 * b * c_red * out_channels,
        transcendentals=b * c_red,
        bytes_accessed=x_flat.size * itemsize + w_bytes + b * out_channels * itemsize,
    )

    y3 = pl.pallas_call(
        kernel,
        out_shape=jax.ShapeDtypeStruct((b, 1, out_channels), x.dtype),
        grid=(b, num_k),
        in_specs=[
            pl.BlockSpec((1, c, t), lambda bi, k: (bi, 0, k)),
            pl.BlockSpec((c, c_red), lambda bi, k: (0, 0)),
            pl.BlockSpec((c_red, out_channels), lambda bi, k: (0, 0)),
        ],
        out_specs=pl.BlockSpec((1, 1, out_channels), lambda bi, k: (bi, 0, 0)),
        scratch_shapes=[pltpu.VMEM((1, c, lane), jnp.float32)],
        compiler_params=pltpu.CompilerParams(
            dimension_semantics=("parallel", "arbitrary"),
            vmem_limit_bytes=vmem_limit,
        ),
        cost_estimate=cost,
    )(x_flat, w1_t, w2_t)

    y = y3.reshape(b, out_channels)
    if out_channels == 1:
        return y.reshape(b, 1, 1, 1)
    return y


def scaleu_reference(x, w1_t, w2_t, out_channels):
    b = x.shape[0]
    pooled = jnp.mean(x.astype(jnp.float32), axis=(2, 3))        # (B, C)
    h = pooled @ w1_t.astype(jnp.float32)
    h = h * jax.nn.sigmoid(h)
    y = h @ w2_t.astype(jnp.float32)
    if out_channels == 1:
        return y.reshape(b, 1, 1, 1)
    return y


if __name__ == "__main__":
    key = jax.random.PRNGKey(0)
    reduction = 16

    # --- Test 1: default out_channels (= channel), single spatial block, f32 ---
    B, C, H, W = 2, 64, 16, 16
    C_red = C // reduction
    out_channels = C
    kx, k1, k2, key = jax.random.split(key, 4)
    x = jax.random.normal(kx, (B, C, H, W), dtype=jnp.float32)
    w1_t = jax.random.normal(k1, (C, C_red), dtype=jnp.float32) * 0.1
    w2_t = jax.random.normal(k2, (C_red, out_channels), dtype=jnp.float32) * 0.1

    y = jax.block_until_ready(scaleu_forward(x, w1_t, w2_t, out_channels=out_channels))
    y_ref = scaleu_reference(x, w1_t, w2_t, out_channels)
    assert y.shape == (B, out_channels), y.shape
    assert jnp.allclose(y, y_ref, atol=1e-5, rtol=1e-5), "mismatch (test 1)"

    # --- Test 2: out_channels=1, multi-block reduction with masked tail
    #     (regression: hw % t != 0 and hw % 128 != 0, via tile override) ---
    B2, C2, H2, W2 = 2, 64, 24, 24             # HW=576 -> 512-wide tile + masked tail
    kx, k1, k2, key = jax.random.split(key, 4)
    x2 = jax.random.normal(kx, (B2, C2, H2, W2), dtype=jnp.float32)
    w1b = jax.random.normal(k1, (C2, C2 // reduction), dtype=jnp.float32) * 0.1
    w2b = jax.random.normal(k2, (C2 // reduction, 1), dtype=jnp.float32) * 0.1

    y2 = jax.block_until_ready(
        scaleu_forward(x2, w1b, w2b, out_channels=1, tile_hw=512))
    y2_ref = scaleu_reference(x2, w1b, w2b, 1)
    assert y2.shape == (B2, 1, 1, 1), y2.shape
    assert jnp.allclose(y2, y2_ref, atol=1e-5, rtol=1e-5), "mismatch (test 2)"

    # --- Test 3: bf16 streaming input (half the HBM bytes), f32 accumulation ---
    xb = x.astype(jnp.bfloat16)
    yb = jax.block_until_ready(scaleu_forward(xb, w1_t, w2_t, out_channels=out_channels))
    yb_ref = scaleu_reference(xb, w1_t, w2_t, out_channels)
    assert jnp.allclose(yb.astype(jnp.float32), yb_ref, atol=1e-2, rtol=1e-2), "mismatch (test 3)"

    # --- Test 4: B=1, larger HW -> single big block, multi-chunk fori_loop path ---
    B4, C4, H4, W4 = 1, 32, 64, 64             # HW=4096 -> 32 lane-chunks, unroll=8
    kx, k1, k2, key = jax.random.split(key, 4)
    x4 = jax.random.normal(kx, (B4, C4, H4, W4), dtype=jnp.float32)
    w1c = jax.random.normal(k1, (C4, C4 // reduction), dtype=jnp.float32) * 0.1
    w2c = jax.random.normal(k2, (C4 // reduction, C4), dtype=jnp.float32) * 0.1

    y4 = jax.block_until_ready(scaleu_forward(x4, w1c, w2c, out_channels=C4))
    y4_ref = scaleu_reference(x4, w1c, w2c, C4)
    assert y4.shape == (B4, C4), y4.shape
    assert jnp.allclose(y4, y4_ref, atol=1e-5, rtol=1e-5), "mismatch (test 4)"

    print("KERNEL_OK")
</pallas_src>

<mosaic_0001>
module attributes {stable_mosaic.version = 11 : i64} {
  func.func @_scaleu_kernel(%arg0: i32, %arg1: i32, %arg2: memref<1x64x256xf32, #tpu.memory_space<vmem>>, %arg3: memref<64x4xf32, #tpu.memory_space<vmem>>, %arg4: memref<4x64xf32, #tpu.memory_space<vmem>>, %arg5: memref<1x1x64xf32, #tpu.memory_space<vmem>>, %arg6: memref<1x64x128xf32, #tpu.memory_space<vmem>>) attributes {dimension_semantics = [#tpu.dimension_semantics<parallel>, #tpu.dimension_semantics<arbitrary>], iteration_bounds = array<i64: 2, 1>, scalar_prefetch = 0 : i64, scratch_operands = 1 : i64, tpu.core_type = #tpu.core_type<tc>, window_params = [{transform_indices = @transform_0, window_bounds = array<i64: 1, 64, 256>}, {pipeline_mode = #tpu.pipeline_mode<synchronous>, transform_indices = @transform_1, window_bounds = array<i64: 64, 4>}, {pipeline_mode = #tpu.pipeline_mode<synchronous>, transform_indices = @transform_2, window_bounds = array<i64: 4, 64>}, {transform_indices = @transform_3, window_bounds = array<i64: 1, 1, 64>}]} {
    %c0_i32 = arith.constant 0 : i32
    %0 = arith.cmpi eq, %arg1, %c0_i32 : i32
    %1 = arith.extui %0 : i1 to i32
    %c0_i32_0 = arith.constant 0 : i32
    %2 = arith.cmpi ne, %1, %c0_i32_0 : i32
    scf.if %2 {
      %cst = arith.constant 0.000000e+00 : f32
      %20 = vector.broadcast %cst : f32 to vector<1x64x128xf32>
      %c0_20 = arith.constant 0 : index
      %c0_21 = arith.constant 0 : index
      %c0_22 = arith.constant 0 : index
      %21 = vector.load %arg6[%c0_20, %c0_21, %c0_22] : memref<1x64x128xf32, #tpu.memory_space<vmem>>, vector<1x64x128xf32>
      tpu.vector_store %arg6[%c0_20, %c0_21, %c0_22], %20 {strides = array<i32>} : memref<1x64x128xf32, #tpu.memory_space<vmem>>, vector<1x64x128xf32>,
    } else {
    }
    %c0_i32_1 = arith.constant 0 : i32
    %c128_i32 = arith.constant 128 : i32
    %3 = arith.muli %c0_i32_1, %c128_i32 : i32
    %4 = tpu.assume_multiple %3, 128 : i32
    %c0 = arith.constant 0 : index
    %c0_2 = arith.constant 0 : index
    %5 = arith.index_cast %4 : i32 to index
    %6 = vector.load %arg2[%c0, %c0_2, %5] : memref<1x64x256xf32, #tpu.memory_space<vmem>>, vector<1x64x128xf32>
    %c0_3 = arith.constant 0 : index
    %c0_4 = arith.constant 0 : index
    %c0_5 = arith.constant 0 : index
    %7 = vector.load %arg6[%c0_3, %c0_4, %c0_5] : memref<1x64x128xf32, #tpu.memory_space<vmem>>, vector<1x64x128xf32>
    %8 = arith.addf %7, %6 : vector<1x64x128xf32>
    %c0_6 = arith.constant 0 : index
    %c0_7 = arith.constant 0 : index
    %c0_8 = arith.constant 0 : index
    %9 = vector.load %arg6[%c0_6, %c0_7, %c0_8] : memref<1x64x128xf32, #tpu.memory_space<vmem>>, vector<1x64x128xf32>
    tpu.vector_store %arg6[%c0_6, %c0_7, %c0_8], %8 {strides = array<i32>} : memref<1x64x128xf32, #tpu.memory_space<vmem>>, vector<1x64x128xf32>,
    %c1_i32 = arith.constant 1 : i32
    %c128_i32_9 = arith.constant 128 : i32
    %10 = arith.muli %c1_i32, %c128_i32_9 : i32
    %11 = tpu.assume_multiple %10, 128 : i32
    %c0_10 = arith.constant 0 : index
    %c0_11 = arith.constant 0 : index
    %12 = arith.index_cast %11 : i32 to index
    %13 = vector.load %arg2[%c0_10, %c0_11, %12] : memref<1x64x256xf32, #tpu.memory_space<vmem>>, vector<1x64x128xf32>
    %c0_12 = arith.constant 0 : index
    %c0_13 = arith.constant 0 : index
    %c0_14 = arith.constant 0 : index
    %14 = vector.load %arg6[%c0_12, %c0_13, %c0_14] : memref<1x64x128xf32, #tpu.memory_space<vmem>>, vector<1x64x128xf32>
    %15 = arith.addf %14, %13 : vector<1x64x128xf32>
    %c0_15 = arith.constant 0 : index
    %c0_16 = arith.constant 0 : index
    %c0_17 = arith.constant 0 : index
    %16 = vector.load %arg6[%c0_15, %c0_16, %c0_17] : memref<1x64x128xf32, #tpu.memory_space<vmem>>, vector<1x64x128xf32>
    tpu.vector_store %arg6[%c0_15, %c0_16, %c0_17], %15 {strides = array<i32>} : memref<1x64x128xf32, #tpu.memory_space<vmem>>, vector<1x64x128xf32>,
    %c2_i32 = arith.constant 2 : i32
    %c0_i32_18 = arith.constant 0 : i32
    %17 = arith.cmpi eq, %arg1, %c0_i32_18 : i32
    %18 = arith.extui %17 : i1 to i32
    %c0_i32_19 = arith.constant 0 : i32
    %19 = arith.cmpi ne, %18, %c0_i32_19 : i32
    scf.if %19 {
      %c0_20 = arith.constant 0 : index
      %c0_21 = arith.constant 0 : index
      %c0_22 = arith.constant 0 : index
      %20 = vector.load %arg6[%c0_20, %c0_21, %c0_22] : memref<1x64x128xf32, #tpu.memory_space<vmem>>, vector<1x64x128xf32>
      %cst = arith.constant dense<0.000000e+00> : vector<1x64xf32>
      %21 = vector.multi_reduction <add>, %20, %cst [2] : vector<1x64x128xf32> to vector<1x64xf32>
      %cst_23 = arith.constant 3.906250e-03 : f32
      %22 = vector.broadcast %cst_23 : f32 to vector<1x64xf32>
      %23 = arith.mulf %21, %22 : vector<1x64xf32>
      %c0_24 = arith.constant 0 : index
      %c0_25 = arith.constant 0 : index
      %24 = vector.load %arg3[%c0_24, %c0_25] : memref<64x4xf32, #tpu.memory_space<vmem>>, vector<64x4xf32>
      %cst_26 = arith.constant dense<0.000000e+00> : vector<1x4xf32>
      %25 = tpu.matmul %23, %24, %cst_26 {dimension_numbers = #tpu.dot_dimension_numbers<[1], [0], [0], [1], [0, 0, 1, 1], [], []>} : vector<1x64xf32>, vector<64x4xf32>, vector<1x4xf32> -> vector<1x4xf32>
      %26 = arith.negf %25 : vector<1x4xf32>
      %27 = math.exp %26 : vector<1x4xf32>
      %cst_27 = arith.constant 1.000000e+00 : f32
      %28 = vector.broadcast %cst_27 : f32 to vector<1x4xf32>
      %29 = arith.addf %28, %27 : vector<1x4xf32>
      %30 = arith.divf %28, %29 : vector<1x4xf32>
      %31 = arith.mulf %25, %30 : vector<1x4xf32>
      %c0_28 = arith.constant 0 : index
      %c0_29 = arith.constant 0 : index
      %32 = vector.load %arg4[%c0_28, %c0_29] : memref<4x64xf32, #tpu.memory_space<vmem>>, vector<4x64xf32>
      %cst_30 = arith.constant dense<0.000000e+00> : vector<1x64xf32>
      %33 = tpu.matmul %31, %32, %cst_30 {dimension_numbers = #tpu.dot_dimension_numbers<[1], [0], [0], [1], [0, 0, 1, 1], [], []>} : vector<1x4xf32>, vector<4x64xf32>, vector<1x64xf32> -> vector<1x64xf32>
      %34 = vector.shape_cast %33 : vector<1x64xf32> to vector<1x1x64xf32>
      %c0_31 = arith.constant 0 : index
      %c0_32 = arith.constant 0 : index
      %c0_33 = arith.constant 0 : index
      %35 = vector.load %arg5[%c0_31, %c0_32, %c0_33] : memref<1x1x64xf32, #tpu.memory_space<vmem>>, vector<1x1x64xf32>
      tpu.vector_store %arg5[%c0_31, %c0_32, %c0_33], %34 {strides = array<i32>} : memref<1x1x64xf32, #tpu.memory_space<vmem>>, vector<1x1x64xf32>,
    } else {
    }
    return
  }
  func.func @transform_0(%arg0: i32, %arg1: i32) -> (i32, i32, i32) {
    %c0_i32 = arith.constant 0 : i32
    %c0_i32_0 = arith.constant 0 : i32
    return %arg0, %c0_i32, %arg1 : i32, i32, i32
  }
  func.func @transform_1(%arg0: i32, %arg1: i32) -> (i32, i32) {
    %c0_i32 = arith.constant 0 : i32
    %c0_i32_0 = arith.constant 0 : i32
    %c0_i32_1 = arith.constant 0 : i32
    return %c0_i32, %c0_i32_0 : i32, i32
  }
  func.func @transform_2(%arg0: i32, %arg1: i32) -> (i32, i32) {
    %c0_i32 = arith.constant 0 : i32
    %c0_i32_0 = arith.constant 0 : i32
    %c0_i32_1 = arith.constant 0 : i32
    return %c0_i32, %c0_i32_0 : i32, i32
  }
  func.func @transform_3(%arg0: i32, %arg1: i32) -> (i32, i32, i32) {
    %c0_i32 = arith.constant 0 : i32
    %c0_i32_0 = arith.constant 0 : i32
    %c0_i32_1 = arith.constant 0 : i32
    return %arg0, %c0_i32, %c0_i32_0 : i32, i32, i32
  }
}

</mosaic_0001>

<bundles_post_ra>
// kernel: scaleu_forward.1
= control target key start
LH: loop header
LB: loop body
LE: loop exit
PB: predicated region body
PF: predicated region fallthrough
CT: control target
= control target key end

     0   :  { %8 = vsyncpa [#allocation4], 0  ;;  %s981_s0 = inlined_call_operand.vmem [shape: f32[2,64,256], index: 0, kind: input, shape index: {}]   ;;  %s982_s1 = inlined_call_operand.vmem [shape: f32[64,4], index: 1, kind: input, shape index: {}]   ;;  %s983_s2 = inlined_call_operand.vmem [shape: f32[4,64], index: 2, kind: input, shape index: {}]   ;;  %s984_s3 = inlined_call_operand.hbm [shape: f32[2,1,64], index: 3, kind: output, shape index: {}]  }
   0x1   :  { %10 = vsyncpa [#allocation4 + $0x1], 0  ;;  %s842_s12 = smov 0   ;;  %s844_s13 = smov 0  }
   0x2   :  { %s846_s14 = smov 0   ;;  %s848_s15 = smov 0  }
   0x3   :  { %s850_s16 = smov 0   ;;  %s852_s17 = smov 0  }
   0x4 LB: > { %s622_s18 = sadd.s32 4294967295, %s817_s17   ;;  %s623_s19 = sadd.s32 4294967294, %s817_s17   ;;  %s817_s17 = sphi %s852_s17, %s16_s17   ;;  %s813_s16 = sphi %s850_s16, %s991_s16   ;;  %s809_s15 = sphi %s848_s15, %s990_s15   ;;  %s805_s14 = sphi %s846_s14, %s989_s14   ;;  %s801_s13 = sphi %s844_s13, %s988_s13   ;;  %s797_s12 = sphi %s842_s12, %s987_s12  }
   0x5   : > { %s28_s20 = sadd.s32 1, %s813_s16  ;;  %s105_s21 = sadd.s32 1, %s805_s14 }
   0x6   : > { %p30_p0 = scmp.ge.s32.totalorder %s28_s20, 2  ;;  %p115_p1 = scmp.ne.s32.totalorder %s805_s14, %s801_s13 }
   0x7   : > { %p116_p2 = scmp.eq.s32.totalorder %s622_s18, 1  ;;  %p121_p3 = scmp.ne.s32.totalorder %s801_s13, %s797_s12 }
   0x8   : > { %s993_s20 = smov (%p30_p0, %s28_s20), 0  ;;  %p122_p5 = scmp.eq.s32.totalorder %s623_s19, 1 }
   0x9   : > { %p882_p4 = por %p116_p2, %p115_p1  ;;  %s102_s23 = ssub.s32 %s813_s16, %s993_s20 }
   0xa   : > { %p626_p6 = scmp.ge.s32.totalorder %s817_s17, 1  ;;  %p103_p7 = scmp.eq.s32.totalorder %s102_s23, 0 }
   0xb   : > { %p889_p8 = por %p122_p5, %p121_p3  ;;  %p159_p9 = scmp.lt.s32.totalorder %s817_s17, 3 }
   0xc   : > { %s895_s25 = scalar_select %p103_p7, %s805_s14, %s105_s21  }
   0xd   : > { %p160_p10 = pnand %p626_p6, %p159_p9 }
   0xe   : > { %p187_p11 = scmp.lt.s32.totalorder (!%p160_p10), %s809_s15, 1  ;;  %s184_s5 = sand.u32 (!%p160_p10), 1, %s801_s13  }
   0xf   : > { %163 = sbr.rel (%p160_p10) target bundleno = 617 (0x269), region = 32  ;;  %s641_s6 = sshll.u32 (!%p160_p10), %s809_s15, 4 }
  0x10   : > { %s185_s7 = scalar_lea.vmem (!%p160_p10), [#allocation3], %s184_s5  ;;  %s935_s11 = scalar_lea.hbm (!%p160_p10), %s984_s3, %s641_s6 }
  0x11   : > { %s553_s8 = sshll.u32 (!%p160_p10), %s185_s7, 4  ;;  %s541_s18 = scalar_lea.sflag (!%p160_p10), [#allocation4], %s184_s5  ;;  %s937_s8 = int_to_ptr.vmem [resolvable:$true] %s553_s8 }
  0x12   : > { %s741_s19 = scalar_lea.vmem (!%p160_p10), %s937_s8, 16 }
  0x13   : > { %p742_p12 = scmp.ne.s32.totalorder (!%p160_p10), %s937_s8, %s741_s19 }
  0x14   : > { %s188_s26 = scalar_select %p187_p11, %s809_s15, 1  ;;  %v819_v24 = vmov 0.0   ;;  %v315_v25 = vld [vmem:[%s982_s1 + $0x38] sm:$0xff]  ;;  %v314_v26 = vld [vmem:[%s982_s1 + $0x30] sm:$0xff]  ;;  %v313_v27 = vld [vmem:[%s982_s1 + $0x28] sm:$0xff]  ;;  %vm820_vm0 = vmmov 0   ;;  %v324_v33 = vlaneseq }
  0x15   : > { %656 = vmatprep.subr.mxu0 %v819_v24  ;;  %675 = vmatprep.subr.mxu1 %v819_v24  ;;  %v312_v28 = vld [vmem:[%s982_s1 + $0x20] sm:$0xff]  ;;  %v311_v29 = vld [vmem:[%s982_s1 + $0x18] sm:$0xff]  ;;  %v310_v30 = vld [vmem:[%s982_s1 + $0x10] sm:$0xff]  ;;  %vm335_vm1 = vcmask 130112   ;;  %vm342_vm2 = vcmask 195712   ;;  %vm349_vm3 = vcmask 261312   ;;  %p743_p13 = pnand %p742_p12, %p882_p4 }
  0x16   : > { %s644_s27 = sshll.u32 %s188_s26, 7  ;;  %657 = vmatpush3.msra.mxu0 %v315_v25  ;;  %v309_v31 = vld [vmem:[%s982_s1 + $0x8] sm:$0xff]  ;;  %v308_v32 = vld [vmem:[%s982_s1] sm:$0xff]  ;;  %672 = vmatprep.mubr.msk.f32.mxu0 %vm820_vm0, %v819_v24  ;;  %v325_v34 = vand.u32 127, %v324_v33  ;;  %v327_v35 = vshrl.u32 %v324_v33, 7  ;;  %vm356_vm4 = vcmask 326912  }
  0x17   : > { %s194_s30 = scalar_lea.vmem %s981_s0, %s644_s27  ;;  %658 = vmatprep.subr.mxu0 %v819_v24  ;;  %677 = vmatprep.mubr.msk.f32.mxu1 %vm820_vm0, %v819_v24  ;;  %vm363_vm5 = vcmask 392512   ;;  %vm370_vm6 = vcmask 458112   ;;  %vm377_vm7 = vcmask 523712   ;;  %vm379_vm8 = vcmask 523264   ;;  %p744_p0 = pneg %p743_p13 }
  0x18   : > { %v208_v0 = vld [vmem:[%s194_s30] sm:$0xff]  ;;  %v629_v1 = vld [vmem:[%s194_s30 + $0x8] sm:$0xff]  ;;  %v209_v5 = vld [vmem:[%s194_s30 + $0x10] sm:$0xff]  ;;  %659 = vmatpush3.msra.mxu0 %v314_v26  ;;  %v330_v36 = vadd.s32 4294967288, %v325_v34  ;;  %v337_v38 = vadd.s32 4294967280, %v325_v34  ;;  %v344_v39 = vadd.s32 4294967272, %v325_v34  ;;  %v328_v41 = vsub.s32 %v325_v34, %v327_v35 }
  0x19   : > { %v210_v2 = vld [vmem:[%s194_s30 + $0x20] sm:$0xff]  ;;  %v257_v3 = vadd.f32 %v629_v1, %v208_v0  ;;  %v631_v4 = vld [vmem:[%s194_s30 + $0x28] sm:$0xff]  ;;  %v630_v6 = vld [vmem:[%s194_s30 + $0x18] sm:$0xff]  ;;  %660 = vmatprep.subr.mxu0 %v819_v24  ;;  %v351_v44 = vadd.s32 4294967264, %v325_v34  ;;  %v358_v49 = vadd.s32 4294967256, %v325_v34  ;;  %v365_v56 = vadd.s32 4294967248, %v325_v34 }
  0x1a   : > { %v259_v7 = vadd.f32 %v631_v4, %v210_v2  ;;  %v211_v8 = vld [vmem:[%s194_s30 + $0x30] sm:$0xff]  ;;  %v632_v9 = vld [vmem:[%s194_s30 + $0x38] sm:$0xff]  ;;  %v258_v10 = vadd.f32 %v630_v6, %v209_v5  ;;  %v212_v12 = vld [vmem:[%s194_s30 + $0x40] sm:$0xff]  ;;  %661 = vmatpush3.msra.mxu0 %v313_v27  ;;  %v333_v43 = vsub.s32 %v330_v36, %v327_v35  ;;  %v340_v45 = vsub.s32 %v337_v38, %v327_v35  ;;  %s821_s15 = smov [#allocation3]  }
  0x1b   : > { %284 = vadd.xlane.f32.xlu0 %v257_v3  ;;  %v260_v11 = vadd.f32 %v632_v9, %v211_v8  ;;  %v633_v13 = vld [vmem:[%s194_s30 + $0x48] sm:$0xff]  ;;  %v213_v14 = vld [vmem:[%s194_s30 + $0x50] sm:$0xff]  ;;  %v634_v15 = vld [vmem:[%s194_s30 + $0x58] sm:$0xff]  ;;  %662 = vmatprep.subr.mxu0 %v819_v24  ;;  %v347_v48 = vsub.s32 %v344_v39, %v327_v35  ;;  %v354_v55 = vsub.s32 %v351_v44, %v327_v35  ;;  %v372_v61 = vadd.s32 4294967240, %v325_v34  ;;  %s745_s21 = sshll.u32 %s821_s15, 4  ;;  %s746_s21 = int_to_ptr.vmem [resolvable:$false] %s745_s21 }
  0x1c   : > { %288 = vadd.xlane.f32.xlu1 %v259_v7  ;;  %v261_v16 = vadd.f32 %v633_v13, %v212_v12  ;;  %v262_v17 = vadd.f32 %v634_v15, %v213_v14  ;;  %v214_v18 = vld [vmem:[%s194_s30 + $0x60] sm:$0xff]  ;;  %v635_v19 = vld [vmem:[%s194_s30 + $0x68] sm:$0xff]  ;;  %v215_v20 = vld [vmem:[%s194_s30 + $0x70] sm:$0xff]  ;;  %663 = vmatpush3.msra.mxu0 %v312_v28  ;;  %v361_v60 = vsub.s32 %v358_v49, %v327_v35  ;;  %vm464_vm9 = vcmask 1043456   ;;  %s747_s23 = scalar_lea.vmem %s746_s21, 32  ;;  %p748_p1 = scmp.lt.s32.totalorder %s937_s8, %s746_s21 }
  0x1d   : > { %v636_v21 = vld [vmem:[%s194_s30 + $0x78] sm:$0xff]  ;;  %v263_v22 = vadd.f32 %v635_v19, %v214_v18  ;;  %664 = vmatprep.subr.mxu0 %v819_v24  ;;  %v368_v5 = vsub.s32 %v365_v56, %v327_v35  ;;  %v375_v8 = vsub.s32 %v372_v61, %v327_v35  ;;  %v459_v18 = vld [vmem:[%s983_s2] sm:$0xf]  ;;  %vm460_vm10 = vcmask 31744   ;;  %p749_p2 = scmp.lt.s32.totalorder %s747_s23, %s741_s19 }
  0x1e   : > { %v264_v23 = vadd.f32 %v636_v21, %v215_v20  ;;  %665 = vmatpush3.msra.mxu0 %v311_v29  ;;  %676 = vmatpush3.msk.msra.mxu1 %vm464_vm9, %v459_v18  ;;  %vm538_vm11 = vcmask 516096  }
  0x1f   : > { %286 = vadd.xlane.f32.xlu0 %v258_v10  ;;  %666 = vmatprep.subr.mxu0 %v819_v24  ;;  %p750_p3 = por %p749_p2, %p748_p1 }
  0x20   : > { %290 = vadd.xlane.f32.xlu1 %v260_v11  ;;  %667 = vmatpush3.msra.mxu0 %v310_v30 }
  0x21   : > { %668 = vmatprep.subr.mxu0 %v819_v24  ;;  %p751_p5 = pnand %p750_p3, %p744_p0 }
  0x22   : > { %669 = vmatpush3.msra.mxu0 %v309_v31 }
  0x23   : > { %292 = vadd.xlane.f32.xlu0 %v261_v16  ;;  %670 = vmatprep.subr.mxu0 %v819_v24 }
  0x24   : > { %294 = vadd.xlane.f32.xlu1 %v262_v17  ;;  %671 = vmatpush3.msra.mxu0 %v308_v32 }
  0x27   : > { %296 = vadd.xlane.f32.xlu0 %v263_v22 }
  0x28   : > { %298 = vadd.xlane.f32.xlu1 %v264_v23 }
  0xa4   : > { %v285_v37 = vpop.xlane.xlu0 %284 }
  0xa5   : > { %v289_v40 = vpop.xlane.xlu1 %288  ;;  %v300_v42 = vmul.f32 0.00390625, %v285_v37 }
  0xa6   : > { %v302_v46 = vmul.f32 0.00390625, %v289_v40 }
  0xa7   : > { %v329_v53 = vrot.slane %v300_v42, %v328_v41 }
  0xa8   : > { %v287_v47 = vpop.xlane.xlu0 %286  ;;  %v341_v57 = vrot.slane %v302_v46, %v340_v45 }
  0xa9   : > { %v301_v50 = vmul.f32 0.00390625, %v287_v47  ;;  %v291_v51 = vpop.xlane.xlu1 %290 }
  0xaa   : > { %v303_v52 = vmul.f32 0.00390625, %v291_v51 }
  0xab   : > { %v334_v54 = vrot.slane %v301_v50, %v333_v43 }
  0xac   : > { %v348_v58 = vrot.slane %v303_v52, %v347_v48  ;;  %v293_v59 = vpop.xlane.xlu0 %292 }
  0xad   : > { %v336_v62 = vsel %vm335_vm1, %v334_v54, %v329_v53  ;;  %v304_v63 = vmul.f32 0.00390625, %v293_v59  ;;  %v295_v0 = vpop.xlane.xlu1 %294 }
  0xae   : > { %v343_v1 = vsel %vm342_vm2, %v341_v57, %v336_v62  ;;  %v305_v2 = vmul.f32 0.00390625, %v295_v0 }
  0xaf   : > { %v350_v3 = vsel %vm349_vm3, %v348_v58, %v343_v1  ;;  %v355_v4 = vrot.slane %v304_v63, %v354_v55 }
  0xb0   : > { %v362_v6 = vrot.slane %v305_v2, %v361_v60  ;;  %v297_v7 = vpop.xlane.xlu0 %296 }
  0xb1   : > { %v357_v9 = vsel %vm356_vm4, %v355_v4, %v350_v3  ;;  %v306_v10 = vmul.f32 0.00390625, %v297_v7  ;;  %v299_v11 = vpop.xlane.xlu1 %298 }
  0xb2   : > { %v307_v12 = vmul.f32 0.00390625, %v299_v11  ;;  %v364_v14 = vsel %vm363_vm5, %v362_v6, %v357_v9 }
  0xb3   : > { %v369_v13 = vrot.slane %v306_v10, %v368_v5 }
  0xb4   : > { %v376_v15 = vrot.slane %v307_v12, %v375_v8 }
  0xb5   : > { %v371_v16 = vsel %vm370_vm6, %v369_v13, %v364_v14 }
  0xb6   : > { %v378_v17 = vsel %vm377_vm7, %v376_v15, %v371_v16 }
  0xb7   : > { %673 = vmatmul.mubr.msk.f32.vlgmr.msra.gmra.mxu0 %vm379_vm8, %v378_v17 }
 0x177   : > { %v448_v19 = vpop.f32.mrf.mxu0 }
 0x178   : > { %v638_v20 = vmul.f32 -1.442695, %v448_v19 }
 0x179   : > { %v674_v21 = vpop.f32.mrf.mxu0 }
 0x17a   : > { %737 = vpow2.f32 %v638_v20 }
 0x187   : > { %v738_v22 = vpop.eup %737 }
 0x188   : > { %v455_v23 = vadd.f32 1.0, %v738_v22 }
 0x18a   : > { %739 = vrcp.f32 %v455_v23 }
 0x197   : > { %v740_v24 = vpop.eup %739 }
 0x198   : > { %v458_v25 = vmul.f32 %v740_v24, %v448_v19 }
 0x19a   : > { %678 = vmatmul.mubr.msk.f32.vlgmr.msra.gmra.mxu1 %vm460_vm10, %v458_v25 }
 0x25a   : > { %v534_v26 = vpop.f32.mrf.mxu1 }
 0x25b   : > { %539 = vst.msk [vmem:[%s185_s7] sm:$0x1] %vm538_vm11, %v534_v26 }
 0x25c   : > { %v679_v27 = vpop.f32.mrf.mxu1 }
 0x25d   : > { %754 = shalt.err (!%p751_p5)
}
 0x25e   : > { %s755_s26 = scalar_lea.hbm %s935_s11, 16  ;;  %s759_s29 = scalar_lea.hbm %s984_s3, 32 }
 0x25f   : > { %p756_p6 = scmp.ne.s32.totalorder %s935_s11, %s755_s26  ;;  %p760_p10 = scmp.lt.s32.totalorder %s935_s11, %s984_s3 }
 0x260   : > { %p761_p11 = scmp.lt.s32.totalorder %s759_s29, %s755_s26 }
 0x261   : > { %p757_p7 = pnand %p756_p6, %p882_p4 }
 0x262   : > { %p762_p12 = por %p761_p11, %p760_p10 }
 0x263   : > { %p758_p9 = pneg %p757_p7 }
 0x265   : > { %p763_p13 = pnand %p762_p12, %p758_p9 }
 0x267   : > { %766 = shalt.err (!%p763_p13)
}
 0x268   : > { %680 = dma.vmem_to_hbm [thread:$0]  (%p882_p4), %s937_s8, 16, %s935_s11, %s541_s18  }
 0x269 PF: > { %p686_p0 = scmp.ge.s32.totalorder %s817_s17, 2  ;;  %s565_s5 = sand.u32 1, %s797_s12  }
 0x26a   : > { %s566_s6 = scalar_lea.sflag [#allocation4], %s565_s5 }
 0x26b   : > { %p683_p1 = pnand %p686_p0, %p889_p8 }
 0x26d   : > { %p684_p2 = pneg %p683_p1 }
 0x26f   : > { %792 = dma.done.wait (%p684_p2), %s566_s6, 16  }
 0x270   : > { %794 = vsyncadd (%p684_p2), %s566_s6, 4294967280  ;;  %s16_s17 = sadd.s32 1, %s817_s17   ;;  %s987_s12 = smov %s801_s13 }
 0x271   : > { %p13_p3 = scmp.ge.s32.totalorder %s16_s17, 4   ;;  %s988_s13 = smov %s805_s14 }
 0x272   : > { %s989_s14 = smov %s895_s25  ;;  %s990_s15 = smov %s813_s16 }
 0x273   : > { %s991_s16 = smov %s993_s20  ;;  %15 = sbr.rel (!%p13_p3) target bundleno = 4 (0x4), region = 76 }
 0x278   :  { %570 = vsyncpa [#allocation4], 1 }
 0x279   :  { %572 = vsyncpa [#allocation4 + $0x1], 1 }

</bundles_post_ra>
